<compile_context>
chip_gen: v6e
topology: v6e:2x2x1
jax: 0.10.0
libtpu: 0.0.40
codegen_flags: <defaults>
</compile_context>

<pallas_src>
import jax
import jax.numpy as jnp
from jax.experimental import pallas as pl
from jax.experimental.pallas import tpu as pltpu


def _mlp_kernel(x_ref, w1_ref, b1_ref, w2_ref, b2_ref, o_ref):
    x = x_ref[...]
    w1 = w1_ref[...]
    n1 = x.shape[1]

    if n1 <= 8:
        # Layer 1 on the VPU: tiny contraction -> n1 broadcast FMAs.
        h = x[:, 0:1] * w1[0:1, :] + b1_ref[...]
        for k in range(1, n1):
            h = h + x[:, k:k + 1] * w1[k:k + 1, :]
    else:
        h = jnp.dot(x, w1, preferred_element_type=jnp.float32) + b1_ref[...]
    h = jnp.maximum(h, 0.0)

    # Layer 2: (tb, n2) @ (n2, n3) on the MXU, f32 accumulate.
    out = jnp.dot(h, w2_ref[...], preferred_element_type=jnp.float32)
    o_ref[...] = (out + b2_ref[...]).astype(o_ref.dtype)


def value_function_forward(x, w1, b1, w2, b2, *, tile_b=4096):
    """2-layer MLP forward, fully inside one gridded Pallas kernel.

    x:  (B, n1)   float32
    w1: (n1, n2)  float32   (transpose of PyTorch Linear.weight)
    b1: (1, n2)   float32
    w2: (n2, n3)  float32
    b2: (1, n3)   float32
    returns: (B, n3) float32
    """
    B, n1 = x.shape
    n2 = w1.shape[1]
    n3 = w2.shape[1]

    if B <= tile_b:
        # Single block covering the whole batch (block == full dim, always legal).
        tb = B
    else:
        # Multiple of 8 sublanes; last (partial) block is clipped by Pallas.
        tb = max(8, (tile_b // 8) * 8)
    grid = (pl.cdiv(B, tb),)

    # Advisory cost so XLA schedules sensibly around the custom call.
    flops = 2 * B * (n1 * n2 + n2 * n3)
    bytes_accessed = 4 * (B * n1 + n1 * n2 + n2 + n2 * n3 + n3 + B * n3)
    cost = pl.CostEstimate(flops=flops, transcendentals=0,
                           bytes_accessed=bytes_accessed)

    out = pl.pallas_call(
        _mlp_kernel,
        out_shape=jax.ShapeDtypeStruct((B, n3), jnp.float32),
        grid_spec=pltpu.PrefetchScalarGridSpec(
            num_scalar_prefetch=0,
            grid=grid,
            in_specs=[
                pl.BlockSpec((tb, n1), lambda i: (i, 0)),   # x: tiled over batch
                pl.BlockSpec((n1, n2), lambda i: (0, 0)),   # W1: VMEM-resident
                pl.BlockSpec((1, n2), lambda i: (0, 0)),    # b1: VMEM-resident
                pl.BlockSpec((n2, n3), lambda i: (0, 0)),   # W2: VMEM-resident
                pl.BlockSpec((1, n3), lambda i: (0, 0)),    # b2: VMEM-resident
            ],
            out_specs=pl.BlockSpec((tb, n3), lambda i: (i, 0)),
        ),
        compiler_params=pltpu.CompilerParams(
            dimension_semantics=("parallel",),
            vmem_limit_bytes=32 * 1024 * 1024,
        ),
        cost_estimate=cost,
    )(x, w1, b1, w2, b2)

    return out


def init_linear_params(key, fan_in, fan_out):
    """Matches PyTorch nn.Linear default init: U[-1/sqrt(fan_in), 1/sqrt(fan_in)]."""
    kw, kb = jax.random.split(key)
    bound = 1.0 / jnp.sqrt(jnp.array(fan_in, jnp.float32))
    # Stored as (in, out) so the kernel computes x @ W directly.
    w = jax.random.uniform(kw, (fan_in, fan_out), jnp.float32, -bound, bound)
    b = jax.random.uniform(kb, (1, fan_out), jnp.float32, -bound, bound)
    return w, b


def reference_forward(x, w1, b1, w2, b2):
    h = jnp.maximum(x @ w1 + b1, 0.0)
    return h @ w2 + b2


if __name__ == "__main__":
    # Pendulum DQN value function: n1 = 3 (state), n2 = 64 (hidden), n3 = 5 (actions).
    batch, n1, n2, n3 = 8, 3, 64, 5

    key = jax.random.PRNGKey(0)
    kx, k1, k2 = jax.random.split(key, 3)

    x = jax.random.normal(kx, (batch, n1), jnp.float32)
    w1, b1 = init_linear_params(k1, n1, n2)
    w2, b2 = init_linear_params(k2, n2, n3)

    out = jax.block_until_ready(value_function_forward(x, w1, b1, w2, b2))
    ref = reference_forward(x, w1, b1, w2, b2)
    assert out.shape == (batch, n3)
    assert jnp.allclose(out, ref, atol=1e-5, rtol=1e-5)

    # Larger, non-multiple-of-8 batch: single-block path (B <= tile_b).
    xb = jax.random.normal(kx, (1000, n1), jnp.float32)
    outb = jax.block_until_ready(value_function_forward(xb, w1, b1, w2, b2))
    refb = reference_forward(xb, w1, b1, w2, b2)
    assert outb.shape == (1000, n3)
    assert jnp.allclose(outb, refb, atol=1e-4, rtol=1e-4)

    # Multi-step grid with a ragged (partial) last tile: exercises clipped writes.
    outc = jax.block_until_ready(
        value_function_forward(xb, w1, b1, w2, b2, tile_b=256))
    assert outc.shape == (1000, n3)
    assert jnp.allclose(outc, refb, atol=1e-4, rtol=1e-4)

    print("KERNEL_OK")
</pallas_src>

<mosaic_0001>
module attributes {stable_mosaic.version = 11 : i64} {
  func.func @_mlp_kernel(%arg0: i32, %arg1: memref<8x3xf32, #tpu.memory_space<vmem>>, %arg2: memref<3x64xf32, #tpu.memory_space<vmem>>, %arg3: memref<1x64xf32, #tpu.memory_space<vmem>>, %arg4: memref<64x5xf32, #tpu.memory_space<vmem>>, %arg5: memref<1x5xf32, #tpu.memory_space<vmem>>, %arg6: memref<8x5xf32, #tpu.memory_space<vmem>>) attributes {dimension_semantics = [#tpu.dimension_semantics<parallel>], iteration_bounds = array<i64: 1>, scalar_prefetch = 0 : i64, scratch_operands = 0 : i64, tpu.core_type = #tpu.core_type<tc>, window_params = [{transform_indices = @transform_0, window_bounds = array<i64: 8, 3>}, {pipeline_mode = #tpu.pipeline_mode<synchronous>, transform_indices = @transform_1, window_bounds = array<i64: 3, 64>}, {pipeline_mode = #tpu.pipeline_mode<synchronous>, transform_indices = @transform_2, window_bounds = array<i64: 1, 64>}, {pipeline_mode = #tpu.pipeline_mode<synchronous>, transform_indices = @transform_3, window_bounds = array<i64: 64, 5>}, {pipeline_mode = #tpu.pipeline_mode<synchronous>, transform_indices = @transform_4, window_bounds = array<i64: 1, 5>}, {transform_indices = @transform_5, window_bounds = array<i64: 8, 5>}]} {
    %c0 = arith.constant 0 : index
    %c0_0 = arith.constant 0 : index
    %0 = vector.load %arg1[%c0, %c0_0] : memref<8x3xf32, #tpu.memory_space<vmem>>, vector<8x3xf32>
    %c0_1 = arith.constant 0 : index
    %c0_2 = arith.constant 0 : index
    %1 = vector.load %arg2[%c0_1, %c0_2] : memref<3x64xf32, #tpu.memory_space<vmem>>, vector<3x64xf32>
    %2 = vector.extract_strided_slice %0 {offsets = [0, 0], sizes = [8, 1], strides = [1, 1]} : vector<8x3xf32> to vector<8x1xf32>
    %3 = vector.extract_strided_slice %1 {offsets = [0, 0], sizes = [1, 64], strides = [1, 1]} : vector<3x64xf32> to vector<1x64xf32>
    %4 = vector.broadcast %2 : vector<8x1xf32> to vector<8x64xf32>
    %5 = vector.broadcast %3 : vector<1x64xf32> to vector<8x64xf32>
    %6 = arith.mulf %4, %5 : vector<8x64xf32>
    %c0_3 = arith.constant 0 : index
    %c0_4 = arith.constant 0 : index
    %7 = vector.load %arg3[%c0_3, %c0_4] : memref<1x64xf32, #tpu.memory_space<vmem>>, vector<1x64xf32>
    %8 = vector.broadcast %7 : vector<1x64xf32> to vector<8x64xf32>
    %9 = arith.addf %6, %8 : vector<8x64xf32>
    %10 = vector.extract_strided_slice %0 {offsets = [0, 1], sizes = [8, 1], strides = [1, 1]} : vector<8x3xf32> to vector<8x1xf32>
    %11 = vector.extract_strided_slice %1 {offsets = [1, 0], sizes = [1, 64], strides = [1, 1]} : vector<3x64xf32> to vector<1x64xf32>
    %12 = vector.broadcast %10 : vector<8x1xf32> to vector<8x64xf32>
    %13 = vector.broadcast %11 : vector<1x64xf32> to vector<8x64xf32>
    %14 = arith.mulf %12, %13 : vector<8x64xf32>
    %15 = arith.addf %9, %14 : vector<8x64xf32>
    %16 = vector.extract_strided_slice %0 {offsets = [0, 2], sizes = [8, 1], strides = [1, 1]} : vector<8x3xf32> to vector<8x1xf32>
    %17 = vector.extract_strided_slice %1 {offsets = [2, 0], sizes = [1, 64], strides = [1, 1]} : vector<3x64xf32> to vector<1x64xf32>
    %18 = vector.broadcast %16 : vector<8x1xf32> to vector<8x64xf32>
    %19 = vector.broadcast %17 : vector<1x64xf32> to vector<8x64xf32>
    %20 = arith.mulf %18, %19 : vector<8x64xf32>
    %21 = arith.addf %15, %20 : vector<8x64xf32>
    %cst = arith.constant 0.000000e+00 : f32
    %22 = vector.broadcast %cst : f32 to vector<8x64xf32>
    %23 = arith.maximumf %21, %22 : vector<8x64xf32>
    %c0_5 = arith.constant 0 : index
    %c0_6 = arith.constant 0 : index
    %24 = vector.load %arg4[%c0_5, %c0_6] : memref<64x5xf32, #tpu.memory_space<vmem>>, vector<64x5xf32>
    %cst_7 = arith.constant dense<0.000000e+00> : vector<8x5xf32>
    %25 = tpu.matmul %23, %24, %cst_7 {dimension_numbers = #tpu.dot_dimension_numbers<[1], [0], [0], [1], [0, 0, 1, 1], [], []>} : vector<8x64xf32>, vector<64x5xf32>, vector<8x5xf32> -> vector<8x5xf32>
    %c0_8 = arith.constant 0 : index
    %c0_9 = arith.constant 0 : index
    %26 = vector.load %arg5[%c0_8, %c0_9] : memref<1x5xf32, #tpu.memory_space<vmem>>, vector<1x5xf32>
    %27 = vector.broadcast %26 : vector<1x5xf32> to vector<8x5xf32>
    %28 = arith.addf %25, %27 : vector<8x5xf32>
    %c0_10 = arith.constant 0 : index
    %c0_11 = arith.constant 0 : index
    %29 = vector.load %arg6[%c0_10, %c0_11] : memref<8x5xf32, #tpu.memory_space<vmem>>, vector<8x5xf32>
    tpu.vector_store %arg6[%c0_10, %c0_11], %28 {strides = array<i32>} : memref<8x5xf32, #tpu.memory_space<vmem>>, vector<8x5xf32>,
    return
  }
  func.func @transform_0(%arg0: i32) -> (i32, i32) {
    %c0_i32 = arith.constant 0 : i32
    %c0_i32_0 = arith.constant 0 : i32
    return %arg0, %c0_i32 : i32, i32
  }
  func.func @transform_1(%arg0: i32) -> (i32, i32) {
    %c0_i32 = arith.constant 0 : i32
    %c0_i32_0 = arith.constant 0 : i32
    %c0_i32_1 = arith.constant 0 : i32
    return %c0_i32, %c0_i32_0 : i32, i32
  }
  func.func @transform_2(%arg0: i32) -> (i32, i32) {
    %c0_i32 = arith.constant 0 : i32
    %c0_i32_0 = arith.constant 0 : i32
    %c0_i32_1 = arith.constant 0 : i32
    return %c0_i32, %c0_i32_0 : i32, i32
  }
  func.func @transform_3(%arg0: i32) -> (i32, i32) {
    %c0_i32 = arith.constant 0 : i32
    %c0_i32_0 = arith.constant 0 : i32
    %c0_i32_1 = arith.constant 0 : i32
    return %c0_i32, %c0_i32_0 : i32, i32
  }
  func.func @transform_4(%arg0: i32) -> (i32, i32) {
    %c0_i32 = arith.constant 0 : i32
    %c0_i32_0 = arith.constant 0 : i32
    %c0_i32_1 = arith.constant 0 : i32
    return %c0_i32, %c0_i32_0 : i32, i32
  }
  func.func @transform_5(%arg0: i32) -> (i32, i32) {
    %c0_i32 = arith.constant 0 : i32
    %c0_i32_0 = arith.constant 0 : i32
    return %arg0, %c0_i32 : i32, i32
  }
}

</mosaic_0001>

<bundles_post_ra>
// kernel: tpu_custom_call.1
= control target key start
LH: loop header
LB: loop body
LE: loop exit
PB: predicated region body
PF: predicated region fallthrough
CT: control target
= control target key end

     0   :  { %v230_v1 = vmov 0   ;;  %v231_v2 = vmov 2   ;;  %s305_s0 = inlined_call_operand.vmem [shape: f32[8,3], index: 0, kind: input, shape index: {}]   ;;  %s306_s1 = inlined_call_operand.vmem [shape: f32[3,64], index: 1, kind: input, shape index: {}]   ;;  %s307_s2 = inlined_call_operand.vmem [shape: f32[1,64], index: 2, kind: input, shape index: {}]   ;;  %s308_s3 = inlined_call_operand.vmem [shape: f32[64,5], index: 3, kind: input, shape index: {}]   ;;  %s309_s4 = inlined_call_operand.vmem [shape: f32[1,5], index: 4, kind: input, shape index: {}]   ;;  %s310_s5 = inlined_call_operand.hbm [shape: f32[8,5], index: 5, kind: output, shape index: {}]  }
   0x1   :  { %v21_v0 = vld [vmem:[%s305_s0] sm:$0xff]  ;;  %204 = vset.pattern.permute.xlu0 %v230_v1  ;;  %206 = vset.pattern.permute.xlu1 %v231_v2  ;;  %v69_v3 = vld [vmem:[%s308_s3 + $0x38] sm:$0xff] }
   0x2   :  { %25 = vperm.xlu0 %204, %v21_v0   ;;  %52 = vperm.xlu1 %206, %v21_v0  }
   0x3   :  { %10 = vsyncpa [#allocation3], 0  ;;  %v232_v4 = vmov 0.0   ;;  %v68_v5 = vld [vmem:[%s308_s3 + $0x30] sm:$0xff]  ;;  %v67_v6 = vld [vmem:[%s308_s3 + $0x28] sm:$0xff]  ;;  %v233_v7 = vmov 1   ;;  %v28_v13 = vlaneseq }
   0x4   :  { %179 = vmatprep.subr.mxu0 %v232_v4  ;;  %v66_v8 = vld [vmem:[%s308_s3 + $0x20] sm:$0xff]  ;;  %v65_v9 = vld [vmem:[%s308_s3 + $0x18] sm:$0xff]  ;;  %vm234_vm0 = vmmov 0   ;;  %v64_v10 = vld [vmem:[%s308_s3 + $0x10] sm:$0xff]  ;;  %vm77_vm1 = vcmask 523264   ;;  %s235_s14 = smov [#allocation2]  }
   0x5   :  { %180 = vmatpush3.msra.mxu0 %v69_v3  ;;  %195 = vmatprep.mubr.msk.f32.mxu0 %vm234_vm0, %v232_v4  ;;  %v63_v11 = vld [vmem:[%s308_s3 + $0x8] sm:$0xff]  ;;  %v62_v12 = vld [vmem:[%s308_s3] sm:$0xff]  ;;  %v29_v14 = vshrl.u32 %v28_v13, 7  ;;  %s159_s15 = sshll.u32 %s235_s14, 4  ;;  %vm151_vm2 = vcmask 39936   ;;  %s160_s15 = int_to_ptr.vmem [resolvable:$true] %s159_s15 }
   0x6   :  { %181 = vmatprep.subr.mxu0 %v232_v4  ;;  %205 = vset.pattern.permute.xlu0 %v233_v7  ;;  %v22_v16 = vld [vmem:[%s306_s1] sm:$0x7]  ;;  %p213_p1 = scmp.lt.s32.totalorder %s160_s15, %s160_s15 }
   0x7   :  { %182 = vmatpush3.msra.mxu0 %v68_v5  ;;  %42 = vperm.xlu0 %205, %v21_v0   ;;  %v30_v15 = vsub.s32 0, %v29_v14  ;;  %v47_v18 = vsub.s32 1, %v29_v14  ;;  %v57_v19 = vsub.s32 2, %v29_v14  ;;  %v167_v24 = vld [vmem:[%s307_s2] ss:$0 sm:$0xff]  ;;  %s208_s2 = scalar_lea.vmem %s160_s15, 128 }
   0x8   :  { %183 = vmatprep.subr.mxu0 %v232_v4  ;;  %v168_v33 = vld [vmem:[%s309_s4] ss:$0 sm:$0xff]  ;;  %p209_p0 = scmp.ne.s32.totalorder %s160_s15, %s208_s2  ;;  %p214_p2 = scmp.lt.s32.totalorder %s208_s2, %s208_s2 }
   0x9   :  { %184 = vmatpush3.msra.mxu0 %v67_v6  ;;  %v31_v17 = vrot.slane %v22_v16, %v30_v15  ;;  %v48_v22 = vrot.slane %v22_v16, %v47_v18  ;;  %v58_v23 = vrot.slane %v22_v16, %v57_v19 }
   0xa   :  { %185 = vmatprep.subr.mxu0 %v232_v4  ;;  %p215_p3 = por %p214_p2, %p213_p1 }
   0xb   :  { %186 = vmatpush3.msra.mxu0 %v66_v8  ;;  %207 = vset.pattern.permute.xlu0 %v231_v2 }
   0xc   :  { %187 = vmatprep.subr.mxu0 %v232_v4  ;;  %p216_p4 = pnand %p215_p3, %p209_p0 }
   0xd   :  { %188 = vmatpush3.msra.mxu0 %v65_v9 }
   0xe   :  { %189 = vmatprep.subr.mxu0 %v232_v4 }
   0xf   :  { %190 = vmatpush3.msra.mxu0 %v64_v10 }
  0x10   :  { %191 = vmatprep.subr.mxu0 %v232_v4 }
  0x11   :  { %192 = vmatpush3.msra.mxu0 %v63_v11 }
  0x12   :  { %193 = vmatprep.subr.mxu0 %v232_v4 }
  0x13   :  { %194 = vmatpush3.msra.mxu0 %v62_v12 }
  0x7d   :  { %v26_v20 = vpop.permute.xlu0 %25  ;;  %v53_v25 = vpop.permute.xlu1 %52 }
  0x7e   :  { %v32_v21 = vmul.f32 %v31_v17, %v26_v20  ;;  %v59_v29 = vmul.f32 %v58_v23, %v53_v25 }
  0x80   :  { %v40_v27 = vadd.f32 %v167_v24, %v32_v21 }
  0x82   :  { %v43_v26 = vpop.permute.xlu0 %42 }
  0x83   :  { %v49_v28 = vmul.f32 %v48_v22, %v43_v26 }
  0x85   :  { %v50_v30 = vadd.f32 %v49_v28, %v40_v27 }
  0x87   :  { %v60_v31 = vadd.f32 %v59_v29, %v50_v30 }
  0x89   :  { %v61_v32 = vmax.f32 %v60_v31, 0.0 }
  0x8b   :  { %196 = vmatmul.mubr.msk.f32.vlgmr.msra.gmra.mxu0 %vm77_vm1, %v61_v32 }
 0x14b   :  { %v147_v34 = vpop.f32.mrf.mxu0 }
 0x14c   :  { %v148_v35 = vadd.f32 %v168_v33, %v147_v34 }
 0x14d   :  { %v197_v36 = vpop.f32.mrf.mxu0 }
 0x14e   :  { %152 = vst.msk [vmem:[#allocation2] sm:$0xff] %vm151_vm2, %v148_v35 }
 0x14f   :  { %219 = shalt.err (!%p216_p4)
}
 0x150   :  { %162 = dma.vmem_to_hbm [thread:$0]  %s160_s15, 128, %s310_s5, [#allocation3]  }
 0x151   :  { %228 = dma.done.wait [#allocation3], 128  }
 0x152   :  { %229 = vsyncadd [#allocation3], 4294967168 }
 0x153   :  { %166 = vsyncpa [#allocation3], 1 }

</bundles_post_ra>
